<compile_context>
chip_gen: v6e
topology: v6e:2x2x1
jax: 0.10.0
libtpu: 0.0.40
codegen_flags: <defaults>
</compile_context>

<pallas_src>
import jax
import jax.numpy as jnp
from jax.experimental import pallas as pl
from jax.experimental.pallas import tpu as pltpu

MAX_NUM_OF_COM = 5
C_PAD = 128          # lane-dense padding of the 5-way output head


def condcom_kernel(sel_ref,        # SMEM (B,)        int32  scalar-prefetch: sel_cols
                   cls_ref,        # VMEM (B, H)      f32    base_net [CLS] output
                   out_ref,        # VMEM (B, S, H)   f32    base_net token outputs (full block)
                   wuv_ref,        # VMEM (2H, H)     bf16   [Wu; Wv] K-concatenated
                   buv_ref,        # VMEM (1, H)      f32    bu + bv
                   wl_ref,         # VMEM (H, C_PAD)  bf16   zero-padded head weight
                   bl_ref,         # VMEM (1, C_PAD)  f32    zero-padded head bias
                   o_ref,          # VMEM (B, C_PAD)  f32
                   gather_vmem):   # VMEM (B, H)      scratch, dtype == out dtype
    B = cls_ref.shape[0]

    # Per-row token gather, entirely in VMEM: gather_vmem[i,:] = out[i, sel_cols[i], :]
    for i in range(B):                                   # B is small & static -> unroll
        gather_vmem[pl.ds(i, 1), :] = out_ref[i, pl.ds(sel_ref[i], 1), :]

    # K-concat fusion: [cls | gathered] @ [Wu; Wv]  ==  cls@Wu + gathered@Wv
    x = jnp.concatenate(
        [cls_ref[...].astype(jnp.bfloat16), gather_vmem[...].astype(jnp.bfloat16)],
        axis=-1)                                          # (B, 2H) bf16
    h = jnp.tanh(jnp.dot(x, wuv_ref[...], preferred_element_type=jnp.float32)
                 + buv_ref[...])                          # f32 VPU/EUP math (v5e-safe)

    # TODO(synk): Dropout(0.3) omitted (inference-mode identity).
    o_ref[...] = (jnp.dot(h.astype(jnp.bfloat16), wl_ref[...],
                          preferred_element_type=jnp.float32) + bl_ref[...])


def prepare_params(params):
    """One-time (init-time) weight preparation; keep OUT of the per-call path."""
    wu, bu, wv, bv, wl, bl = params
    H = wu.shape[0]
    C = MAX_NUM_OF_COM
    wuv = jnp.concatenate([wu, wv], axis=0).astype(jnp.bfloat16)          # (2H, H)
    buv = (bu + bv).astype(jnp.float32).reshape(1, H)                     # (1, H)
    wl_p = jnp.zeros((H, C_PAD), jnp.bfloat16).at[:, :C].set(wl.astype(jnp.bfloat16))
    bl_p = jnp.zeros((1, C_PAD), jnp.float32).at[:, :C].set(
        bl.astype(jnp.float32).reshape(1, -1))
    return wuv, buv, wl_p, bl_p


def condcom_forward(cls, out, sel_cols, prepared):
    B, H = cls.shape
    S = out.shape[1]
    C = MAX_NUM_OF_COM
    wuv, buv, wl_p, bl_p = prepared

    cost = pl.CostEstimate(
        flops=2 * B * (2 * H) * H + 2 * B * H * C_PAD,
        transcendentals=B * H,
        bytes_accessed=(cls.size * cls.dtype.itemsize
                        + out.size * out.dtype.itemsize
                        + wuv.size * 2 + wl_p.size * 2
                        + (buv.size + bl_p.size) * 4
                        + B * C_PAD * 4),
    )

    grid_spec = pltpu.PrefetchScalarGridSpec(
        num_scalar_prefetch=1,
        grid=(1,),
        in_specs=[
            pl.BlockSpec((B, H), lambda g, sel: (0, 0)),           # cls (f32)
            pl.BlockSpec((B, S, H), lambda g, sel: (0, 0, 0)),     # out, one full-block DMA
            pl.BlockSpec((2 * H, H), lambda g, sel: (0, 0)),       # [Wu; Wv] bf16
            pl.BlockSpec((1, H), lambda g, sel: (0, 0)),           # bu + bv
            pl.BlockSpec((H, C_PAD), lambda g, sel: (0, 0)),       # wl padded bf16
            pl.BlockSpec((1, C_PAD), lambda g, sel: (0, 0)),       # bl padded
        ],
        out_specs=pl.BlockSpec((B, C_PAD), lambda g, sel: (0, 0)),
        scratch_shapes=[
            pltpu.VMEM((B, H), out.dtype),   # gathered rows; dtype kept in lockstep with `out`
        ],
    )

    out_padded = pl.pallas_call(
        condcom_kernel,
        out_shape=jax.ShapeDtypeStruct((B, C_PAD), jnp.float32),
        grid_spec=grid_spec,
        compiler_params=pltpu.CompilerParams(
            dimension_semantics=("arbitrary",)),
        cost_estimate=cost,
    )(sel_cols.astype(jnp.int32), cls, out, wuv, buv, wl_p, bl_p)

    return out_padded[:, :C]


def reference(cls, out, sel_cols, params):
    # Precision-matched reference (bf16 MXU operands, f32 accumulation), like the kernel.
    wu, bu, wv, bv, wl, bl = params
    bf = jnp.bfloat16
    gathered = out[jnp.arange(out.shape[0]), sel_cols, :]
    u = jnp.dot(cls.astype(bf), wu.astype(bf), preferred_element_type=jnp.float32) + bu
    v = jnp.dot(gathered.astype(bf), wv.astype(bf), preferred_element_type=jnp.float32) + bv
    h = jnp.tanh(u + v)
    return jnp.dot(h.astype(bf), wl.astype(bf), preferred_element_type=jnp.float32) + bl


if __name__ == "__main__":
    # Small shapes consistent with the forward (production hidden=768).
    B, S, H = 8, 16, 256
    C = MAX_NUM_OF_COM

    key = jax.random.PRNGKey(0)
    k = jax.random.split(key, 9)

    cls = jax.random.normal(k[0], (B, H), dtype=jnp.float32)
    out = jax.random.normal(k[1], (B, S, H), dtype=jnp.float32)
    sel_cols = jax.random.randint(k[2], (B,), 0, S, dtype=jnp.int32)

    # PyTorch Linear weights stored transposed as (in, out).
    scale = 1.0 / (H ** 0.5)
    wu = jax.random.uniform(k[3], (H, H), minval=-scale, maxval=scale, dtype=jnp.float32)
    bu = jax.random.uniform(k[4], (1, H), minval=-scale, maxval=scale, dtype=jnp.float32)
    wv = jax.random.uniform(k[5], (H, H), minval=-scale, maxval=scale, dtype=jnp.float32)
    bv = jax.random.uniform(k[6], (1, H), minval=-scale, maxval=scale, dtype=jnp.float32)
    wl = jax.random.uniform(k[7], (H, C), minval=-scale, maxval=scale, dtype=jnp.float32)
    bl = jax.random.uniform(k[8], (1, C), minval=-scale, maxval=scale, dtype=jnp.float32)
    params = (wu, bu, wv, bv, wl, bl)

    # One-time weight prep (hoisted out of the per-call path).
    prepared = jax.tree.map(jax.block_until_ready, prepare_params(params))

    res = condcom_forward(cls, out, sel_cols, prepared)
    res = jax.block_until_ready(res)

    ref = reference(cls, out, sel_cols, params)
    assert res.shape == (B, C)
    assert jnp.allclose(res, ref, rtol=1e-2, atol=1e-2), "mismatch vs reference"

    print("KERNEL_OK")
</pallas_src>

<mosaic_0001>
module attributes {stable_mosaic.version = 11 : i64} {
  func.func @condcom_kernel(%arg0: i32, %arg1: memref<8xi32, #tpu.memory_space<smem>>, %arg2: memref<8x256xf32, #tpu.memory_space<vmem>>, %arg3: memref<8x16x256xf32, #tpu.memory_space<vmem>>, %arg4: memref<512x256xbf16, #tpu.memory_space<vmem>>, %arg5: memref<1x256xf32, #tpu.memory_space<vmem>>, %arg6: memref<256x128xbf16, #tpu.memory_space<vmem>>, %arg7: memref<1x128xf32, #tpu.memory_space<vmem>>, %arg8: memref<8x128xf32, #tpu.memory_space<vmem>>, %arg9: memref<8x256xf32, #tpu.memory_space<vmem>>) attributes {dimension_semantics = [#tpu.dimension_semantics<arbitrary>], iteration_bounds = array<i64: 1>, scalar_prefetch = 1 : i64, scratch_operands = 1 : i64, tpu.core_type = #tpu.core_type<tc>, window_params = [{pipeline_mode = #tpu.pipeline_mode<synchronous>, transform_indices = @transform_0, window_bounds = array<i64: 8, 256>}, {pipeline_mode = #tpu.pipeline_mode<synchronous>, transform_indices = @transform_1, window_bounds = array<i64: 8, 16, 256>}, {pipeline_mode = #tpu.pipeline_mode<synchronous>, transform_indices = @transform_2, window_bounds = array<i64: 512, 256>}, {pipeline_mode = #tpu.pipeline_mode<synchronous>, transform_indices = @transform_3, window_bounds = array<i64: 1, 256>}, {pipeline_mode = #tpu.pipeline_mode<synchronous>, transform_indices = @transform_4, window_bounds = array<i64: 256, 128>}, {pipeline_mode = #tpu.pipeline_mode<synchronous>, transform_indices = @transform_5, window_bounds = array<i64: 1, 128>}, {pipeline_mode = #tpu.pipeline_mode<synchronous>, transform_indices = @transform_6, window_bounds = array<i64: 8, 128>}]} {
    %c0 = arith.constant 0 : index
    %0 = memref.load %arg1[%c0] : memref<8xi32, #tpu.memory_space<smem>>
    %c0_0 = arith.constant 0 : index
    %1 = arith.index_cast %0 : i32 to index
    %c0_1 = arith.constant 0 : index
    %2 = vector.load %arg3[%c0_0, %1, %c0_1] : memref<8x16x256xf32, #tpu.memory_space<vmem>>, vector<1x1x256xf32>
    %3 = vector.shape_cast %2 : vector<1x1x256xf32> to vector<1x256xf32>
    %c0_2 = arith.constant 0 : index
    %c0_3 = arith.constant 0 : index
    %4 = vector.load %arg9[%c0_2, %c0_3] : memref<8x256xf32, #tpu.memory_space<vmem>>, vector<1x256xf32>
    tpu.vector_store %arg9[%c0_2, %c0_3], %3 {strides = array<i32>} : memref<8x256xf32, #tpu.memory_space<vmem>>, vector<1x256xf32>,
    %c1 = arith.constant 1 : index
    %5 = memref.load %arg1[%c1] : memref<8xi32, #tpu.memory_space<smem>>
    %c1_4 = arith.constant 1 : index
    %6 = arith.index_cast %5 : i32 to index
    %c0_5 = arith.constant 0 : index
    %7 = vector.load %arg3[%c1_4, %6, %c0_5] : memref<8x16x256xf32, #tpu.memory_space<vmem>>, vector<1x1x256xf32>
    %8 = vector.shape_cast %7 : vector<1x1x256xf32> to vector<1x256xf32>
    %c1_6 = arith.constant 1 : index
    %c0_7 = arith.constant 0 : index
    %9 = vector.load %arg9[%c1_6, %c0_7] : memref<8x256xf32, #tpu.memory_space<vmem>>, vector<1x256xf32>
    tpu.vector_store %arg9[%c1_6, %c0_7], %8 {strides = array<i32>} : memref<8x256xf32, #tpu.memory_space<vmem>>, vector<1x256xf32>,
    %c2 = arith.constant 2 : index
    %10 = memref.load %arg1[%c2] : memref<8xi32, #tpu.memory_space<smem>>
    %c2_8 = arith.constant 2 : index
    %11 = arith.index_cast %10 : i32 to index
    %c0_9 = arith.constant 0 : index
    %12 = vector.load %arg3[%c2_8, %11, %c0_9] : memref<8x16x256xf32, #tpu.memory_space<vmem>>, vector<1x1x256xf32>
    %13 = vector.shape_cast %12 : vector<1x1x256xf32> to vector<1x256xf32>
    %c2_10 = arith.constant 2 : index
    %c0_11 = arith.constant 0 : index
    %14 = vector.load %arg9[%c2_10, %c0_11] : memref<8x256xf32, #tpu.memory_space<vmem>>, vector<1x256xf32>
    tpu.vector_store %arg9[%c2_10, %c0_11], %13 {strides = array<i32>} : memref<8x256xf32, #tpu.memory_space<vmem>>, vector<1x256xf32>,
    %c3 = arith.constant 3 : index
    %15 = memref.load %arg1[%c3] : memref<8xi32, #tpu.memory_space<smem>>
    %c3_12 = arith.constant 3 : index
    %16 = arith.index_cast %15 : i32 to index
    %c0_13 = arith.constant 0 : index
    %17 = vector.load %arg3[%c3_12, %16, %c0_13] : memref<8x16x256xf32, #tpu.memory_space<vmem>>, vector<1x1x256xf32>
    %18 = vector.shape_cast %17 : vector<1x1x256xf32> to vector<1x256xf32>
    %c3_14 = arith.constant 3 : index
    %c0_15 = arith.constant 0 : index
    %19 = vector.load %arg9[%c3_14, %c0_15] : memref<8x256xf32, #tpu.memory_space<vmem>>, vector<1x256xf32>
    tpu.vector_store %arg9[%c3_14, %c0_15], %18 {strides = array<i32>} : memref<8x256xf32, #tpu.memory_space<vmem>>, vector<1x256xf32>,
    %c4 = arith.constant 4 : index
    %20 = memref.load %arg1[%c4] : memref<8xi32, #tpu.memory_space<smem>>
    %c4_16 = arith.constant 4 : index
    %21 = arith.index_cast %20 : i32 to index
    %c0_17 = arith.constant 0 : index
    %22 = vector.load %arg3[%c4_16, %21, %c0_17] : memref<8x16x256xf32, #tpu.memory_space<vmem>>, vector<1x1x256xf32>
    %23 = vector.shape_cast %22 : vector<1x1x256xf32> to vector<1x256xf32>
    %c4_18 = arith.constant 4 : index
    %c0_19 = arith.constant 0 : index
    %24 = vector.load %arg9[%c4_18, %c0_19] : memref<8x256xf32, #tpu.memory_space<vmem>>, vector<1x256xf32>
    tpu.vector_store %arg9[%c4_18, %c0_19], %23 {strides = array<i32>} : memref<8x256xf32, #tpu.memory_space<vmem>>, vector<1x256xf32>,
    %c5 = arith.constant 5 : index
    %25 = memref.load %arg1[%c5] : memref<8xi32, #tpu.memory_space<smem>>
    %c5_20 = arith.constant 5 : index
    %26 = arith.index_cast %25 : i32 to index
    %c0_21 = arith.constant 0 : index
    %27 = vector.load %arg3[%c5_20, %26, %c0_21] : memref<8x16x256xf32, #tpu.memory_space<vmem>>, vector<1x1x256xf32>
    %28 = vector.shape_cast %27 : vector<1x1x256xf32> to vector<1x256xf32>
    %c5_22 = arith.constant 5 : index
    %c0_23 = arith.constant 0 : index
    %29 = vector.load %arg9[%c5_22, %c0_23] : memref<8x256xf32, #tpu.memory_space<vmem>>, vector<1x256xf32>
    tpu.vector_store %arg9[%c5_22, %c0_23], %28 {strides = array<i32>} : memref<8x256xf32, #tpu.memory_space<vmem>>, vector<1x256xf32>,
    %c6 = arith.constant 6 : index
    %30 = memref.load %arg1[%c6] : memref<8xi32, #tpu.memory_space<smem>>
    %c6_24 = arith.constant 6 : index
    %31 = arith.index_cast %30 : i32 to index
    %c0_25 = arith.constant 0 : index
    %32 = vector.load %arg3[%c6_24, %31, %c0_25] : memref<8x16x256xf32, #tpu.memory_space<vmem>>, vector<1x1x256xf32>
    %33 = vector.shape_cast %32 : vector<1x1x256xf32> to vector<1x256xf32>
    %c6_26 = arith.constant 6 : index
    %c0_27 = arith.constant 0 : index
    %34 = vector.load %arg9[%c6_26, %c0_27] : memref<8x256xf32, #tpu.memory_space<vmem>>, vector<1x256xf32>
    tpu.vector_store %arg9[%c6_26, %c0_27], %33 {strides = array<i32>} : memref<8x256xf32, #tpu.memory_space<vmem>>, vector<1x256xf32>,
    %c7 = arith.constant 7 : index
    %35 = memref.load %arg1[%c7] : memref<8xi32, #tpu.memory_space<smem>>
    %c7_28 = arith.constant 7 : index
    %36 = arith.index_cast %35 : i32 to index
    %c0_29 = arith.constant 0 : index
    %37 = vector.load %arg3[%c7_28, %36, %c0_29] : memref<8x16x256xf32, #tpu.memory_space<vmem>>, vector<1x1x256xf32>
    %38 = vector.shape_cast %37 : vector<1x1x256xf32> to vector<1x256xf32>
    %c7_30 = arith.constant 7 : index
    %c0_31 = arith.constant 0 : index
    %39 = vector.load %arg9[%c7_30, %c0_31] : memref<8x256xf32, #tpu.memory_space<vmem>>, vector<1x256xf32>
    tpu.vector_store %arg9[%c7_30, %c0_31], %38 {strides = array<i32>} : memref<8x256xf32, #tpu.memory_space<vmem>>, vector<1x256xf32>,
    %c0_32 = arith.constant 0 : index
    %c0_33 = arith.constant 0 : index
    %40 = vector.load %arg2[%c0_32, %c0_33] : memref<8x256xf32, #tpu.memory_space<vmem>>, vector<8x256xf32>
    %41 = arith.truncf %40 : vector<8x256xf32> to vector<8x256xbf16>
    %c0_34 = arith.constant 0 : index
    %c0_35 = arith.constant 0 : index
    %42 = vector.load %arg9[%c0_34, %c0_35] : memref<8x256xf32, #tpu.memory_space<vmem>>, vector<8x256xf32>
    %43 = arith.truncf %42 : vector<8x256xf32> to vector<8x256xbf16>
    %44 = tpu.concatenate %41, %43 in 1 : vector<8x256xbf16>, vector<8x256xbf16> -> vector<8x512xbf16>
    %c0_36 = arith.constant 0 : index
    %c0_37 = arith.constant 0 : index
    %45 = vector.load %arg4[%c0_36, %c0_37] : memref<512x256xbf16, #tpu.memory_space<vmem>>, vector<512x256xbf16>
    %cst = arith.constant dense<0.000000e+00> : vector<8x256xf32>
    %46 = tpu.matmul %44, %45, %cst {dimension_numbers = #tpu.dot_dimension_numbers<[1], [0], [0], [1], [0, 0, 1, 1], [], []>} : vector<8x512xbf16>, vector<512x256xbf16>, vector<8x256xf32> -> vector<8x256xf32>
    %c0_38 = arith.constant 0 : index
    %c0_39 = arith.constant 0 : index
    %47 = vector.load %arg5[%c0_38, %c0_39] : memref<1x256xf32, #tpu.memory_space<vmem>>, vector<1x256xf32>
    %48 = vector.broadcast %47 : vector<1x256xf32> to vector<8x256xf32>
    %49 = arith.addf %46, %48 : vector<8x256xf32>
    %50 = math.tanh %49 : vector<8x256xf32>
    %51 = arith.truncf %50 : vector<8x256xf32> to vector<8x256xbf16>
    %c0_40 = arith.constant 0 : index
    %c0_41 = arith.constant 0 : index
    %52 = vector.load %arg6[%c0_40, %c0_41] : memref<256x128xbf16, #tpu.memory_space<vmem>>, vector<256x128xbf16>
    %cst_42 = arith.constant dense<0.000000e+00> : vector<8x128xf32>
    %53 = tpu.matmul %51, %52, %cst_42 {dimension_numbers = #tpu.dot_dimension_numbers<[1], [0], [0], [1], [0, 0, 1, 1], [], []>} : vector<8x256xbf16>, vector<256x128xbf16>, vector<8x128xf32> -> vector<8x128xf32>
    %c0_43 = arith.constant 0 : index
    %c0_44 = arith.constant 0 : index
    %54 = vector.load %arg7[%c0_43, %c0_44] : memref<1x128xf32, #tpu.memory_space<vmem>>, vector<1x128xf32>
    %55 = vector.broadcast %54 : vector<1x128xf32> to vector<8x128xf32>
    %56 = arith.addf %53, %55 : vector<8x128xf32>
    %c0_45 = arith.constant 0 : index
    %c0_46 = arith.constant 0 : index
    %57 = vector.load %arg8[%c0_45, %c0_46] : memref<8x128xf32, #tpu.memory_space<vmem>>, vector<8x128xf32>
    tpu.vector_store %arg8[%c0_45, %c0_46], %56 {strides = array<i32>} : memref<8x128xf32, #tpu.memory_space<vmem>>, vector<8x128xf32>,
    return
  }
  func.func @transform_0(%arg0: i32, %arg1: memref<8xi32, #tpu.memory_space<smem>>) -> (i32, i32) {
    %c0_i32 = arith.constant 0 : i32
    %c0_i32_0 = arith.constant 0 : i32
    %c0_i32_1 = arith.constant 0 : i32
    return %c0_i32, %c0_i32_0 : i32, i32
  }
  func.func @transform_1(%arg0: i32, %arg1: memref<8xi32, #tpu.memory_space<smem>>) -> (i32, i32, i32) {
    %c0_i32 = arith.constant 0 : i32
    %c0_i32_0 = arith.constant 0 : i32
    %c0_i32_1 = arith.constant 0 : i32
    %c0_i32_2 = arith.constant 0 : i32
    return %c0_i32, %c0_i32_0, %c0_i32_1 : i32, i32, i32
  }
  func.func @transform_2(%arg0: i32, %arg1: memref<8xi32, #tpu.memory_space<smem>>) -> (i32, i32) {
    %c0_i32 = arith.constant 0 : i32
    %c0_i32_0 = arith.constant 0 : i32
    %c0_i32_1 = arith.constant 0 : i32
    return %c0_i32, %c0_i32_0 : i32, i32
  }
  func.func @transform_3(%arg0: i32, %arg1: memref<8xi32, #tpu.memory_space<smem>>) -> (i32, i32) {
    %c0_i32 = arith.constant 0 : i32
    %c0_i32_0 = arith.constant 0 : i32
    %c0_i32_1 = arith.constant 0 : i32
    return %c0_i32, %c0_i32_0 : i32, i32
  }
  func.func @transform_4(%arg0: i32, %arg1: memref<8xi32, #tpu.memory_space<smem>>) -> (i32, i32) {
    %c0_i32 = arith.constant 0 : i32
    %c0_i32_0 = arith.constant 0 : i32
    %c0_i32_1 = arith.constant 0 : i32
    return %c0_i32, %c0_i32_0 : i32, i32
  }
  func.func @transform_5(%arg0: i32, %arg1: memref<8xi32, #tpu.memory_space<smem>>) -> (i32, i32) {
    %c0_i32 = arith.constant 0 : i32
    %c0_i32_0 = arith.constant 0 : i32
    %c0_i32_1 = arith.constant 0 : i32
    return %c0_i32, %c0_i32_0 : i32, i32
  }
  func.func @transform_6(%arg0: i32, %arg1: memref<8xi32, #tpu.memory_space<smem>>) -> (i32, i32) {
    %c0_i32 = arith.constant 0 : i32
    %c0_i32_0 = arith.constant 0 : i32
    %c0_i32_1 = arith.constant 0 : i32
    return %c0_i32, %c0_i32_0 : i32, i32
  }
}

</mosaic_0001>

<bundles_post_ra>
// kernel: tpu_custom_call.1
= control target key start
LH: loop header
LB: loop body
LE: loop exit
PB: predicated region body
PF: predicated region fallthrough
CT: control target
= control target key end

     0   :  { %s1284_s24 = smov [#allocation4]   ;;  %s1440_s0 = inlined_call_operand.hbm [shape: s32[8], index: 0, kind: input, shape index: {}]   ;;  %s1441_s1 = inlined_call_operand.hbm [shape: f32[8,256], index: 1, kind: input, shape index: {}]   ;;  %s1442_s2 = inlined_call_operand.hbm [shape: f32[8,16,256], index: 2, kind: input, shape index: {}]   ;;  %s1443_s3 = inlined_call_operand.hbm [shape: bf16[512,256], index: 3, kind: input, shape index: {}]   ;;  %s1444_s4 = inlined_call_operand.vmem [shape: f32[1,256], index: 4, kind: input, shape index: {}]   ;;  %s1445_s5 = inlined_call_operand.hbm [shape: bf16[256,128], index: 5, kind: input, shape index: {}]   ;;  %s1446_s6 = inlined_call_operand.vmem [shape: f32[1,128], index: 6, kind: input, shape index: {}]   ;;  %s1447_s7 = inlined_call_operand.hbm [shape: f32[8,128], index: 7, kind: output, shape index: {}]  }
   0x1   :  { %13 = dma.hbm_to_smem %s1440_s0, 16, %s1284_s24, [#allocation3] }
   0x2   :  { %1274 = dma.done.wait [#allocation3], 16 }
   0x3   :  { %1275 = vsyncadd [#allocation3], 4294967280 }
   0x4   :  { %15 = sfence }
   0x5   :  { %16 = vsyncpa [#allocation6], 0 }
   0x6   :  { %17 = vsyncpa [#allocation9], 0 }
   0x7   :  { %18 = vsyncpa [#allocation12], 0 }
   0x8   :  { %19 = vsyncpa [#allocation7], 0  ;;  %s1285_s27 = smov [#allocation8]  }
   0x9   :  { %s35_s28 = sshll.u32 %s1285_s27, 4  ;;  %s36_s28 = int_to_ptr.vmem [resolvable:$true] %s35_s28 }
   0xa   :  { %s1182_s29 = scalar_lea.vmem %s36_s28, 4096  ;;  %p1187_p1 = scmp.lt.s32.totalorder %s36_s28, %s36_s28 }
   0xb   :  { %p1183_p0 = scmp.ne.s32.totalorder %s36_s28, %s1182_s29  ;;  %p1188_p2 = scmp.lt.s32.totalorder %s1182_s29, %s1182_s29 }
   0xd   :  { %p1189_p3 = por %p1188_p2, %p1187_p1 }
   0xf   :  { %p1190_p4 = pnand %p1189_p3, %p1183_p0 }
  0x11   :  { %1193 = shalt.err (!%p1190_p4)
}
  0x12   :  { %s1286_s30 = smov 256   ;;  %s1287_s8 = smov 16  }
  0x13   :  { %41 = dma.hbm_to_vmem [thread:$0]  %s1442_s2, 4096, %s36_s28, [#allocation9], %s1286_s30, %s1286_s30, %s1287_s8  }
  0x14   :  { %s1288_s10 = smov [#allocation5]   ;;  %s1289_s12 = smov [#allocation10]  }
  0x15   :  { %s26_s11 = sshll.u32 %s1288_s10, 4  ;;  %s47_s13 = sshll.u32 %s1289_s12, 4  ;;  %s27_s11 = int_to_ptr.vmem [resolvable:$true] %s26_s11  ;;  %s48_s13 = int_to_ptr.vmem [resolvable:$true] %s47_s13 }
  0x16   :  { %s1202_s14 = scalar_lea.vmem %s27_s11, 256  ;;  %p1207_p6 = scmp.lt.s32.totalorder %s27_s11, %s27_s11 }
  0x17   :  { %p1203_p5 = scmp.ne.s32.totalorder %s27_s11, %s1202_s14  ;;  %p1208_p7 = scmp.lt.s32.totalorder %s1202_s14, %s1202_s14 }
  0x19   :  { %p1209_p8 = por %p1208_p7, %p1207_p6 }
  0x1b   :  { %p1210_p9 = pnand %p1209_p8, %p1203_p5 }
  0x1d   :  { %1213 = shalt.err (!%p1210_p9)
}
  0x1e   :  { %29 = dma.hbm_to_vmem [thread:$0]  %s1441_s1, 256, %s27_s11, [#allocation6]  }
  0x1f   :  { %s1222_s17 = scalar_lea.vmem %s48_s13, 8192  ;;  %p1227_p11 = scmp.lt.s32.totalorder %s48_s13, %s48_s13 }
  0x20   :  { %p1223_p10 = scmp.ne.s32.totalorder %s48_s13, %s1222_s17  ;;  %p1228_p12 = scmp.lt.s32.totalorder %s1222_s17, %s1222_s17 }
  0x22   :  { %p1229_p13 = por %p1228_p12, %p1227_p11 }
  0x24   :  { %p1230_p0 = pnand %p1229_p13, %p1223_p10 }
  0x26   :  { %1233 = shalt.err (!%p1230_p0)
}
  0x27   :  { %s1290_s2 = smov 128   ;;  %s1291_s18 = smov 8  }
  0x28   :  { %53 = dma.hbm_to_vmem [thread:$0]  %s1443_s3, 8192, %s48_s13, [#allocation9], %s1290_s2, %s1290_s2, %s1291_s18  }
  0x29   :  { %s1292_s21 = smov [#allocation11]  }
  0x2a   :  { %s61_s22 = sshll.u32 %s1292_s21, 4  ;;  %s62_s22 = int_to_ptr.vmem [resolvable:$true] %s61_s22 }
  0x2b   :  { %s1242_s23 = scalar_lea.vmem %s62_s22, 2048  ;;  %p1247_p2 = scmp.lt.s32.totalorder %s62_s22, %s62_s22 }
  0x2c   :  { %p1243_p1 = scmp.ne.s32.totalorder %s62_s22, %s1242_s23  ;;  %p1248_p3 = scmp.lt.s32.totalorder %s1242_s23, %s1242_s23 }
  0x2e   :  { %p1249_p4 = por %p1248_p3, %p1247_p2 }
  0x30   :  { %p1250_p5 = pnand %p1249_p4, %p1243_p1 }
  0x32   :  { %1253 = shalt.err (!%p1250_p5)
}
  0x33   :  { %s1293_s1 = smov 64   ;;  %s1294_s24 = smov 4  }
  0x34   :  { %67 = dma.hbm_to_vmem [thread:$0]  %s1445_s5, 2048, %s62_s22, [#allocation12], %s1293_s1, %s1293_s1, %s1294_s24  }
  0x35   :  { %1276 = dma.done.wait [#allocation6], 256  }
  0x36   :  { %1277 = vsyncadd [#allocation6], 4294967040 }
  0x37   :  { %1278 = dma.done.wait [#allocation9], 12288  }
  0x38   :  { %1279 = vsyncadd [#allocation9], 4294955008 }
  0x39   :  { %1280 = dma.done.wait [#allocation12], 2048  }
  0x3a   :  { %1281 = vsyncadd [#allocation12], 4294965248  ;;  %v1050_v0 = vld [vmem:[#allocation10 + $0x74] ss:$8 sps:$4 sm:$0xff]   ;;  %v1054_v2 = vld [vmem:[#allocation10 + $0x70] ss:$8 sps:$4 sm:$0xff]   ;;  %v93_v40 = vlaneseq }
  0x3b   :  { %v1052_v1 = vld [vmem:[#allocation10 + $0x174] ss:$8 sps:$4 sm:$0xff]   ;;  %601 = vmatprep.subr.bf16.mxu0 %v1050_v0  ;;  %v1055_v3 = vld [vmem:[#allocation10 + $0x170] ss:$8 sps:$4 sm:$0xff]   ;;  %v1056_v4 = vld [vmem:[#allocation10 + $0x64] ss:$8 sps:$4 sm:$0xff]  }
  0x3c   :  { %642 = vmatprep.subr.bf16.mxu1 %v1052_v1  ;;  %602 = vmatpush1.bf16.msra.mxu0 %v1054_v2  ;;  %v1058_v5 = vld [vmem:[#allocation10 + $0x164] ss:$8 sps:$4 sm:$0xff]   ;;  %v1060_v6 = vld [vmem:[#allocation10 + $0x60] ss:$8 sps:$4 sm:$0xff]   ;;  %v1062_v8 = vld [vmem:[#allocation10 + $0x54] ss:$8 sps:$4 sm:$0xff]  }
  0x3d   :  { %643 = vmatpush1.bf16.msra.mxu1 %v1055_v3  ;;  %603 = vmatprep.subr.bf16.mxu0 %v1056_v4  ;;  %v1061_v7 = vld [vmem:[#allocation10 + $0x160] ss:$8 sps:$4 sm:$0xff]   ;;  %v1064_v9 = vld [vmem:[#allocation10 + $0x154] ss:$8 sps:$4 sm:$0xff]   ;;  %v1066_v10 = vld [vmem:[#allocation10 + $0x50] ss:$8 sps:$4 sm:$0xff]  }
  0x3e   :  { %644 = vmatprep.subr.bf16.mxu1 %v1058_v5  ;;  %v1067_v11 = vld [vmem:[#allocation10 + $0x150] ss:$8 sps:$4 sm:$0xff]   ;;  %v1068_v12 = vld [vmem:[#allocation10 + $0x44] ss:$8 sps:$4 sm:$0xff]   ;;  %s1351_s3 = sld [smem:[#allocation4]]  ;;  %vm1400_vm0 = vcmp.lt.s32.totalorder %v93_v40, 256 }
  0x3f   :  { %v1070_v13 = vld [vmem:[#allocation10 + $0x144] ss:$8 sps:$4 sm:$0xff]   ;;  %v1072_v14 = vld [vmem:[#allocation10 + $0x40] ss:$8 sps:$4 sm:$0xff]   ;;  %s1353_s5 = sld [smem:[#allocation4 + $0x1]]  ;;  %v198_v50 = vld [vmem:[#allocation5 + $0x8] sm:$0xff] }
  0x40   :  { %604 = vmatpush1.bf16.msra.mxu0 %v1060_v6  ;;  %v1073_v15 = vld [vmem:[#allocation10 + $0x140] ss:$8 sps:$4 sm:$0xff]   ;;  %v1074_v16 = vld [vmem:[#allocation10 + $0x34] ss:$8 sps:$4 sm:$0xff]   ;;  %v1078_v18 = vld [vmem:[#allocation10 + $0x30] ss:$8 sps:$4 sm:$0xff]   ;;  %v200_v53 = vpack.c.bf16 %v198_v50, %v198_v50 }
  0x41   :  { %645 = vmatpush1.bf16.msra.mxu1 %v1061_v7  ;;  %605 = vmatprep.subr.bf16.mxu0 %v1062_v8  ;;  %v1076_v17 = vld [vmem:[#allocation10 + $0x134] ss:$8 sps:$4 sm:$0xff]   ;;  %v1079_v19 = vld [vmem:[#allocation10 + $0x130] ss:$8 sps:$4 sm:$0xff]   ;;  %s1355_s27 = sld [smem:[#allocation4 + $0x2]] }
  0x42   :  { %646 = vmatprep.subr.bf16.mxu1 %v1064_v9  ;;  %v1080_v20 = vld [vmem:[#allocation10 + $0x24] ss:$8 sps:$4 sm:$0xff]   ;;  %s1357_s28 = sld [smem:[#allocation4 + $0x3]]  ;;  %v1084_v22 = vld [vmem:[#allocation10 + $0x20] ss:$8 sps:$4 sm:$0xff]   ;;  %633 = vmatprep.mubr.bf16.mxu0 %v200_v53 }
  0x43   :  { %v1082_v21 = vld [vmem:[#allocation10 + $0x124] ss:$8 sps:$4 sm:$0xff]   ;;  %s1359_s29 = sld [smem:[#allocation4 + $0x4]]  ;;  %v1085_v23 = vld [vmem:[#allocation10 + $0x120] ss:$8 sps:$4 sm:$0xff]  }
  0x44   :  { %606 = vmatpush1.bf16.msra.mxu0 %v1066_v10  ;;  %s84_s30 = sshra.s32 %s1351_s3, 3  ;;  %s1362_s8 = sld [smem:[#allocation4 + $0x5]]  ;;  %v1086_v24 = vld [vmem:[#allocation10 + $0x14] ss:$8 sps:$4 sm:$0xff]   ;;  %v1090_v26 = vld [vmem:[#allocation10 + $0x10] ss:$8 sps:$4 sm:$0xff]  }
  0x45   :  { %647 = vmatpush1.bf16.msra.mxu1 %v1067_v11  ;;  %607 = vmatprep.subr.bf16.mxu0 %v1068_v12  ;;  %s100_s0 = sshra.s32 %s1353_s5, 3  ;;  %v1088_v25 = vld [vmem:[#allocation10 + $0x114] ss:$8 sps:$4 sm:$0xff]   ;;  %s87_s9 = sand.u32 7, %s1351_s3  ;;  %v1091_v27 = vld [vmem:[#allocation10 + $0x110] ss:$8 sps:$4 sm:$0xff]  }
  0x46   :  { %648 = vmatprep.subr.bf16.mxu1 %v1070_v13  ;;  %s1015_s10 = sshll.u32 %s84_s30, 4  ;;  %s103_s11 = sand.u32 7, %s1353_s5  ;;  %v1092_v28 = vld [vmem:[#allocation10 + $0x4] ss:$8 sps:$4 sm:$0xff]   ;;  %v1096_v30 = vld [vmem:[#allocation10] ss:$8 sps:$4 sm:$0xff]  }
  0x47   :  { %s914_s12 = sshll.u32 %s100_s0, 4  ;;  %s114_s13 = sshra.s32 %s1355_s27, 3  ;;  %v1094_v29 = vld [vmem:[#allocation10 + $0x104] ss:$8 sps:$4 sm:$0xff]   ;;  %v1097_v31 = vld [vmem:[#allocation10 + $0x100] ss:$8 sps:$4 sm:$0xff]  }
  0x48   :  { %608 = vmatpush1.bf16.msra.mxu0 %v1072_v14  ;;  %s1368_s14 = sadd.s32 %s1015_s10, %s87_s9  ;;  %s1370_s15 = sld [smem:[#allocation4 + $0x6]]  ;;  %v1098_v32 = vld [vmem:[#allocation10 + $0xf4] ss:$8 sps:$4 sm:$0xff]   ;;  %v1102_v34 = vld [vmem:[#allocation10 + $0xf0] ss:$8 sps:$4 sm:$0xff]  }
  0x49   :  { %649 = vmatpush1.bf16.msra.mxu1 %v1073_v15  ;;  %609 = vmatprep.subr.bf16.mxu0 %v1074_v16  ;;  %s1372_s16 = sadd.s32 %s914_s12, %s103_s11  ;;  %s1374_s17 = sld [smem:[#allocation4 + $0x7]]  ;;  %v1100_v33 = vld [vmem:[#allocation10 + $0x1f4] ss:$8 sps:$4 sm:$0xff]   ;;  %v1103_v35 = vld [vmem:[#allocation10 + $0x1f0] ss:$8 sps:$4 sm:$0xff]  }
  0x4a   :  { %650 = vmatprep.subr.bf16.mxu1 %v1076_v17  ;;  %s117_s2 = sand.u32 7, %s1355_s27  ;;  %s917_s18 = sshll.u32 %s114_s13, 4  ;;  %v1104_v36 = vld [vmem:[#allocation10 + $0xe4] ss:$8 sps:$4 sm:$0xff]   ;;  %v1108_v38 = vld [vmem:[#allocation10 + $0xe0] ss:$8 sps:$4 sm:$0xff]  }
  0x4b   :  { %s128_s19 = sshra.s32 %s1357_s28, 3  ;;  %s1378_s20 = sadd.s32 %s917_s18, %s117_s2  ;;  %v1106_v37 = vld [vmem:[#allocation10 + $0x1e4] ss:$8 sps:$4 sm:$0xff]   ;;  %v1109_v39 = vld [vmem:[#allocation10 + $0x1e0] ss:$8 sps:$4 sm:$0xff]   ;;  %v197_v14 = vld [vmem:[#allocation5] sm:$0xff] }
  0x4c   :  { %610 = vmatpush1.bf16.msra.mxu0 %v1078_v18  ;;  %s131_s21 = sand.u32 7, %s1357_s28  ;;  %s142_s22 = sshra.s32 %s1359_s29, 3  ;;  %v1110_v41 = vld [vmem:[#allocation10 + $0xd4] ss:$8 sps:$4 sm:$0xff]   ;;  %v1114_v43 = vld [vmem:[#allocation10 + $0xd0] ss:$8 sps:$4 sm:$0xff]   ;;  %v199_v17 = vpack.c.bf16 %v197_v14, %v197_v14 }
  0x4d   :  { %651 = vmatpush1.bf16.msra.mxu1 %v1079_v19  ;;  %611 = vmatprep.subr.bf16.mxu0 %v1080_v20  ;;  %s920_s23 = sshll.u32 %s128_s19, 4  ;;  %s156_s1 = sshra.s32 %s1362_s8, 3  ;;  %v1112_v42 = vld [vmem:[#allocation10 + $0x1d4] ss:$8 sps:$4 sm:$0xff]   ;;  %v1115_v44 = vld [vmem:[#allocation10 + $0x1d0] ss:$8 sps:$4 sm:$0xff]  }
  0x4e   :  { %652 = vmatprep.subr.bf16.mxu1 %v1082_v21  ;;  %s145_s24 = sand.u32 7, %s1359_s29  ;;  %s170_s25 = sshra.s32 %s1370_s15, 3  ;;  %v1116_v46 = vld [vmem:[#allocation10 + $0xc4] ss:$8 sps:$4 sm:$0xff]   ;;  %v1120_v48 = vld [vmem:[#allocation10 + $0xc0] ss:$8 sps:$4 sm:$0xff]  }
  0x4f   :  { %s923_s26 = sshll.u32 %s142_s22, 4  ;;  %s184_s3 = sshra.s32 %s1374_s17, 3  ;;  %v1118_v47 = vld [vmem:[#allocation10 + $0x1c4] ss:$8 sps:$4 sm:$0xff]   ;;  %v1121_v49 = vld [vmem:[#allocation10 + $0x1c0] ss:$8 sps:$4 sm:$0xff]  }
  0x50   :  { %612 = vmatpush1.bf16.msra.mxu0 %v1084_v22  ;;  %s159_s5 = sand.u32 7, %s1362_s8  ;;  %s926_s27 = sshll.u32 %s156_s1, 4  ;;  %v1122_v51 = vld [vmem:[#allocation10 + $0xb4] ss:$8 sps:$4 sm:$0xff]   ;;  %v1126_v60 = vld [vmem:[#allocation10 + $0xb0] ss:$8 sps:$4 sm:$0xff]  }
  0x51   :  { %653 = vmatpush1.bf16.msra.mxu1 %v1085_v23  ;;  %613 = vmatprep.subr.bf16.mxu0 %v1086_v24  ;;  %s173_s30 = sand.u32 7, %s1370_s15  ;;  %s929_s0 = sshll.u32 %s170_s25, 4  ;;  %v1124_v52 = vld [vmem:[#allocation10 + $0x1b4] ss:$8 sps:$4 sm:$0xff]   ;;  %v1127_v63 = vld [vmem:[#allocation10 + $0x1b0] ss:$8 sps:$4 sm:$0xff]  }
  0x52   :  { %654 = vmatprep.subr.bf16.mxu1 %v1088_v25  ;;  %s187_s9 = sand.u32 7, %s1374_s17  ;;  %s932_s29 = sshll.u32 %s184_s3, 4  ;;  %v1128_v0 = vld [vmem:[#allocation10 + $0xa4] ss:$8 sps:$4 sm:$0xff]   ;;  %v1132_v2 = vld [vmem:[#allocation10 + $0xa0] ss:$8 sps:$4 sm:$0xff]  }
  0x53   :  { %s1391_s10 = sadd.s32 %s920_s23, %s131_s21  ;;  %s1393_s11 = sadd.s32 %s923_s26, %s145_s24  ;;  %v1130_v1 = vld [vmem:[#allocation10 + $0x1a4] ss:$8 sps:$4 sm:$0xff]   ;;  %v1133_v3 = vld [vmem:[#allocation10 + $0x1a0] ss:$8 sps:$4 sm:$0xff]   ;;  %v1134_v4 = vld [vmem:[#allocation10 + $0x94] ss:$8 sps:$4 sm:$0xff]  }
  0x54   :  { %614 = vmatpush1.bf16.msra.mxu0 %v1090_v26  ;;  %s1395_s12 = sadd.s32 %s926_s27, %s159_s5  ;;  %s1397_s8 = sadd.s32 %s929_s0, %s173_s30  ;;  %v1136_v5 = vld [vmem:[#allocation10 + $0x194] ss:$8 sps:$4 sm:$0xff]   ;;  %v1138_v6 = vld [vmem:[#allocation10 + $0x90] ss:$8 sps:$4 sm:$0xff]   ;;  %v1140_v9 = vld [vmem:[#allocation10 + $0x84] ss:$8 sps:$4 sm:$0xff]  }
  0x55   :  { %655 = vmatpush1.bf16.msra.mxu1 %v1091_v27  ;;  %615 = vmatprep.subr.bf16.mxu0 %v1092_v28  ;;  %s1404_s13 = sadd.s32 %s932_s29, %s187_s9  ;;  %s91_s28 = scalar_lea.vmem [#allocation8], %s1368_s14  ;;  %v1139_v7 = vld [vmem:[#allocation10 + $0x190] ss:$8 sps:$4 sm:$0xff]   ;;  %v1142_v10 = vld [vmem:[#allocation10 + $0x184] ss:$8 sps:$4 sm:$0xff]  }
  0x56   :  { %656 = vmatprep.subr.bf16.mxu1 %v1094_v29  ;;  %v92_v54 = vld [vmem:[%s91_s28] ss:$8 sm:$0x3]  ;;  %s885_s15 = scalar_lea.vmem [#allocation8], %s1372_s16  ;;  %s889_s17 = scalar_lea.vmem [#allocation8], %s1378_s20  ;;  %v1146_v16 = vld [vmem:[#allocation11 + $0x78] sm:$0xff]  }
  0x57   :  { %v915_v55 = vld [vmem:[%s885_s15 + $0x20] ss:$8 sm:$0x3]  ;;  %97 = vst.msk [vmem:[#allocation2] ss:$8 sm:$0x3] %vm1400_vm0, %v92_v54 }
  0x58   :  { %616 = vmatpush1.bf16.msra.mxu0 %v1096_v30  ;;  %111 = vst.msk [vmem:[#allocation2 + $0x1] ss:$8 sm:$0x3] %vm1400_vm0, %v915_v55  ;;  %v918_v56 = vld [vmem:[%s889_s17 + $0x40] ss:$8 sm:$0x3] }
  0x59   :  { %657 = vmatpush1.bf16.msra.mxu1 %v1097_v31  ;;  %617 = vmatprep.subr.bf16.mxu0 %v1098_v32  ;;  %s893_s2 = scalar_lea.vmem [#allocation8], %s1391_s10  ;;  %125 = vst.msk [vmem:[#allocation2 + $0x2] ss:$8 sm:$0x3] %vm1400_vm0, %v918_v56  ;;  %s897_s14 = scalar_lea.vmem [#allocation8], %s1393_s11  ;;  %v1147_v19 = vld [vmem:[#allocation11 + $0x38] sm:$0xff]  }
  0x5a   :  { %658 = vmatprep.subr.bf16.mxu1 %v1100_v33  ;;  %v921_v57 = vld [vmem:[%s893_s2 + $0x60] ss:$8 sm:$0x3]  ;;  %s901_s16 = scalar_lea.vmem [#allocation8], %s1395_s12  ;;  %s905_s18 = scalar_lea.vmem [#allocation8], %s1397_s8  ;;  %v1148_v20 = vld [vmem:[#allocation11 + $0x70] sm:$0xff]  }
  0x5b   :  { %139 = vst.msk [vmem:[#allocation2 + $0x3] ss:$8 sm:$0x3] %vm1400_vm0, %v921_v57  ;;  %v924_v58 = vld [vmem:[%s897_s14 + $0x80] ss:$8 sm:$0x3] }
  0x5c   :  { %618 = vmatpush2.bf16.msra.mxu0 %v1102_v34  ;;  %v927_v59 = vld [vmem:[%s901_s16 + $0xa0] ss:$8 sm:$0x3]  ;;  %153 = vst.msk [vmem:[#allocation2 + $0x4] ss:$8 sm:$0x3] %vm1400_vm0, %v924_v58 }
  0x5d   :  { %659 = vmatpush2.bf16.msra.mxu1 %v1103_v35  ;;  %619 = vmatprep.subr.bf16.mxu0 %v1104_v36  ;;  %167 = vst.msk [vmem:[#allocation2 + $0x5] ss:$8 sm:$0x3] %vm1400_vm0, %v927_v59  ;;  %v930_v61 = vld [vmem:[%s905_s18 + $0xc0] ss:$8 sm:$0x3] }
  0x5e   :  { %660 = vmatprep.subr.bf16.mxu1 %v1106_v37  ;;  %s909_s19 = scalar_lea.vmem [#allocation8], %s1404_s13  ;;  %181 = vst.msk [vmem:[#allocation2 + $0x6] ss:$8 sm:$0x3] %vm1400_vm0, %v930_v61  ;;  %v1144_v12 = vld [vmem:[#allocation10 + $0x80] ss:$8 sps:$4 sm:$0xff]  }
  0x5f   :  { %v933_v62 = vld [vmem:[%s909_s19 + $0xe0] ss:$8 sm:$0x3]  ;;  %v1149_v21 = vld [vmem:[#allocation11 + $0x30] sm:$0xff]   ;;  %v1154_v26 = vld [vmem:[#allocation11 + $0x58] sm:$0xff]   ;;  %v272_v34 = vshrl.u32 %v93_v40, 7 }
  0x60   :  { %620 = vmatpush2.bf16.msra.mxu0 %v1108_v38  ;;  %195 = vst.msk [vmem:[#allocation2 + $0x7] ss:$8 sm:$0x3] %vm1400_vm0, %v933_v62  ;;  %v1145_v13 = vld [vmem:[#allocation10 + $0x180] ss:$8 sps:$4 sm:$0xff]   ;;  %v1155_v27 = vld [vmem:[#allocation11 + $0x18] sm:$0xff]  }
  0x61   :  { %661 = vmatpush2.bf16.msra.mxu1 %v1109_v39  ;;  %621 = vmatprep.subr.bf16.mxu0 %v1110_v41  ;;  %v1150_v22 = vld [vmem:[#allocation11 + $0x68] sm:$0xff]   ;;  %v1152_v24 = vld [vmem:[#allocation11 + $0x60] sm:$0xff]   ;;  %v1156_v28 = vld [vmem:[#allocation11 + $0x50] sm:$0xff]   ;;  %v273_v35 = vsub.s32 0, %v272_v34  ;;  %v277_v37 = vsub.s32 1, %v272_v34  ;;  %s1295_s23 = smov [#allocation13]  }
  0x62   :  { %662 = vmatprep.subr.bf16.mxu1 %v1112_v42  ;;  %v1151_v23 = vld [vmem:[#allocation11 + $0x28] sm:$0xff]   ;;  %v1153_v25 = vld [vmem:[#allocation11 + $0x20] sm:$0xff]   ;;  %v1157_v29 = vld [vmem:[#allocation11 + $0x10] sm:$0xff]   ;;  %s869_s1 = sshll.u32 %s1295_s23, 4  ;;  %s870_s1 = int_to_ptr.vmem [resolvable:$true] %s869_s1 }
  0x63   :  { %v1158_v30 = vld [vmem:[#allocation11 + $0x48] sm:$0xff]   ;;  %v1160_v32 = vld [vmem:[#allocation11 + $0x40] sm:$0xff]   ;;  %s1254_s24 = scalar_lea.vmem %s870_s1, 128  ;;  %p1259_p7 = scmp.lt.s32.totalorder %s870_s1, %s870_s1 }
  0x64   :  { %622 = vmatpush2.bf16.msra.mxu0 %v1114_v43  ;;  %v1159_v31 = vld [vmem:[#allocation11 + $0x8] sm:$0xff]   ;;  %v1161_v33 = vld [vmem:[#allocation11] sm:$0xff]   ;;  %p1255_p6 = scmp.ne.s32.totalorder %s870_s1, %s1254_s24  ;;  %p1260_p8 = scmp.lt.s32.totalorder %s1254_s24, %s1254_s24 }
  0x65   :  { %663 = vmatpush2.bf16.msra.mxu1 %v1115_v44  ;;  %623 = vmatprep.subr.bf16.mxu0 %v1116_v46  ;;  %v269_v36 = vld [vmem:[%s1444_s4] sm:$0x3] }
  0x66   :  { %664 = vmatprep.subr.bf16.mxu1 %v1118_v47  ;;  %v274_v38 = vrot.slane %v269_v36, %v273_v35  ;;  %v278_v39 = vrot.slane %v269_v36, %v277_v37  ;;  %v998_v57 = vld [vmem:[%s1446_s6] ss:$0 sm:$0xff]  ;;  %p1261_p9 = por %p1260_p8, %p1259_p7 }
  0x67   :  { %v202_v8 = vld [vmem:[#allocation2 + $0x8] sm:$0xff]  ;;  %v201_v15 = vld [vmem:[#allocation2] sm:$0xff] }
  0x68   :  { %624 = vmatpush2.bf16.msra.mxu0 %v1120_v48  ;;  %v204_v11 = vpack.c.bf16 %v202_v8, %v202_v8  ;;  %v203_v18 = vpack.c.bf16 %v201_v15, %v201_v15  ;;  %p1262_p10 = pnand %p1261_p9, %p1255_p6 }
  0x69   :  { %665 = vmatpush2.bf16.msra.mxu1 %v1121_v49  ;;  %625 = vmatprep.subr.bf16.mxu0 %v1122_v51 }
  0x6a   :  { %666 = vmatprep.subr.bf16.mxu1 %v1124_v52  ;;  %674 = vmatprep.mubr.bf16.mxu1 %v204_v11 }
  0x6c   :  { %626 = vmatpush2.bf16.msra.mxu0 %v1126_v60 }
  0x6d   :  { %667 = vmatpush2.bf16.msra.mxu1 %v1127_v63  ;;  %627 = vmatprep.subr.bf16.mxu0 %v1128_v0 }
  0x6e   :  { %668 = vmatprep.subr.bf16.mxu1 %v1130_v1 }
  0x70   :  { %628 = vmatpush2.bf16.msra.mxu0 %v1132_v2 }
  0x71   :  { %669 = vmatpush2.bf16.msra.mxu1 %v1133_v3  ;;  %629 = vmatprep.subr.bf16.mxu0 %v1134_v4 }
  0x72   :  { %670 = vmatprep.subr.bf16.mxu1 %v1136_v5 }
  0x74   :  { %630 = vmatpush2.bf16.msra.mxu0 %v1138_v6 }
  0x75   :  { %671 = vmatpush2.bf16.msra.mxu1 %v1139_v7  ;;  %631 = vmatprep.subr.bf16.mxu0 %v1140_v9 }
  0x76   :  { %672 = vmatprep.subr.bf16.mxu1 %v1142_v10 }
  0x78   :  { %632 = vmatpush2.bf16.msra.mxu0 %v1144_v12 }
  0x79   :  { %673 = vmatpush2.bf16.msra.mxu1 %v1145_v13  ;;  %1016 = vmatprep.subr.bf16.mxu0 %v1146_v16 }
  0x7b   :  { %634 = vmatmul.mubr.bf16.vlgmr.msra.gmra.mxu0 %v199_v17 }
  0x7c   :  { %675 = vmatmul.mubr.bf16.vlgmr.msra.gmra.mxu1 %v203_v18  ;;  %1017 = vmatpush3.bf16.msra.mxu0 %v1147_v19 }
  0x7d   :  { %1018 = vmatprep.subr.bf16.mxu0 %v1148_v20 }
  0x80   :  { %1019 = vmatpush3.bf16.msra.mxu0 %v1149_v21 }
  0x81   :  { %1020 = vmatprep.subr.bf16.mxu0 %v1150_v22 }
  0x84   :  { %1021 = vmatpush3.bf16.msra.mxu0 %v1151_v23 }
  0x85   :  { %1022 = vmatprep.subr.bf16.mxu0 %v1152_v24 }
  0x88   :  { %1023 = vmatpush3.bf16.msra.mxu0 %v1153_v25 }
  0x89   :  { %1024 = vmatprep.subr.bf16.mxu0 %v1154_v26 }
  0x8c   :  { %1025 = vmatpush3.bf16.msra.mxu0 %v1155_v27 }
  0x8d   :  { %1026 = vmatprep.subr.bf16.mxu0 %v1156_v28 }
  0x90   :  { %1027 = vmatpush3.bf16.msra.mxu0 %v1157_v29 }
  0x91   :  { %1028 = vmatprep.subr.bf16.mxu0 %v1158_v30 }
  0x94   :  { %1029 = vmatpush3.bf16.msra.mxu0 %v1159_v31 }
  0x95   :  { %1030 = vmatprep.subr.bf16.mxu0 %v1160_v32 }
  0x98   :  { %1031 = vmatpush3.bf16.msra.mxu0 %v1161_v33 }
 0x13b   :  { %v635_v41 = vpop.f32.mrf.mxu0 }
 0x13c   :  { %v676_v42 = vpop.f32.mrf.mxu1  ;;  %v636_v43 = vadd.f32 %v635_v41, %v274_v38 }
 0x13d   :  { %v637_v44 = vpop.f32.mrf.mxu0 }
 0x13e   :  { %v678_v45 = vpop.f32.mrf.mxu1  ;;  %v677_v46 = vadd.f32 %v676_v42, %v636_v43  ;;  %v638_v47 = vadd.f32 %v637_v44, %v278_v39 }
 0x13f   :  { %v639_v48 = vpop.f32.mrf.mxu0 }
 0x140   :  { %v680_v49 = vpop.f32.mrf.mxu1  ;;  %v679_v50 = vadd.f32 %v678_v45, %v638_v47  ;;  %1162 = vtanh.f32 %v677_v46 }
 0x141   :  { %v640_v40 = vpop.f32.mrf.mxu0 }
 0x142   :  { %v681_v51 = vpop.f32.mrf.mxu1  ;;  %1164 = vtanh.f32 %v679_v50 }
 0x14d   :  { %v1163_v52 = vpop.eup %1162 }
 0x14e   :  { %v685_v55 = vpack.c.bf16 %v1163_v52, %v1163_v52 }
 0x14f   :  { %v1165_v53 = vpop.eup %1164 }
 0x150   :  { %v686_v54 = vpack.c.bf16 %v1165_v53, %v1165_v53 }
 0x152   :  { %854 = vmatprep.mubr.bf16.mxu0 %v686_v54 }
 0x153   :  { %855 = vmatmul.mubr.bf16.vlgmr.msra.gmra.mxu0 %v685_v55 }
 0x213   :  { %v1032_v56 = vpop.f32.mrf.mxu0 }
 0x215   :  { %v1033_v58 = vpop.f32.mrf.mxu0 }
 0x216   :  { %v1034_v59 = vadd.f32 %v1033_v58, %v1032_v56 }
 0x217   :  { %v1035_v60 = vpop.f32.mrf.mxu0 }
 0x218   :  { %v857_v61 = vadd.f32 %v1034_v59, %v998_v57 }
 0x219   :  { %v1036_v62 = vpop.f32.mrf.mxu0 }
 0x21a   :  { %862 = vst [vmem:[#allocation13] sm:$0xff] %v857_v61 }
 0x21b   :  { %1265 = shalt.err (!%p1262_p10)
}
 0x21c   :  { %872 = dma.vmem_to_hbm [thread:$0]  %s870_s1, 128, %s1447_s7, [#allocation7]  }
 0x21d   :  { %1282 = dma.done.wait [#allocation7], 128  }
 0x21e   :  { %1283 = vsyncadd [#allocation7], 4294967168 }
 0x21f   :  { %876 = vsyncpa [#allocation6], 1 }
 0x220   :  { %877 = vsyncpa [#allocation9], 1 }
 0x221   :  { %878 = vsyncpa [#allocation12], 1 }
 0x222   :  { %879 = vsyncpa [#allocation7], 1 }

</bundles_post_ra>
